<compile_context>
chip_gen: v6e
topology: v6e:2x2x1
jax: 0.10.0
libtpu: 0.0.40
codegen_flags: <defaults>
</compile_context>

<pallas_src>
import jax
import jax.numpy as jnp
from jax.experimental import pallas as pl
from jax.experimental.pallas import tpu as pltpu


# ----------------------------- kernels --------------------------------------


def _dense_kernel(x_ref, w_ref, b_ref, o_ref):
    # x_ref: (TM, H) streamed activation tile; w_ref: (H, H) resident (pre-transposed);
    # b_ref: (1, H) resident f32 bias; o_ref: (TM, H) output tile.
    acc = jnp.dot(x_ref[...], w_ref[...], preferred_element_type=jnp.float32)
    acc = acc + b_ref[...]
    o_ref[...] = acc.astype(o_ref.dtype)


def _dense_residual_kernel(x_ref, r_ref, w_ref, b_ref, o_ref):
    # Optional fused epilogue: adds the residual (input_tensor) tile.  NOTE: this
    # changes the module boundary vs. the PyTorch reference (SegformerLayer's add).
    acc = jnp.dot(x_ref[...], w_ref[...], preferred_element_type=jnp.float32)
    acc = acc + b_ref[...] + r_ref[...].astype(jnp.float32)
    o_ref[...] = acc.astype(o_ref.dtype)


# ----------------------------- helpers --------------------------------------


def _round_up(x, m):
    return ((x + m - 1) // m) * m


def _vmem_budget_bytes():
    """Generation-aware VMEM budget for picking the row tile."""
    cap = None
    try:
        cap = getattr(pltpu.get_tpu_info(), "vmem_capacity_bytes", None)
    except Exception:  # noqa: BLE001 - fall back to the most conservative value
        cap = None
    if cap is None:
        cap = 64 * 1024 * 1024  # assume v7x-sized VMEM if unknown
    if cap >= 96 * 1024 * 1024:  # v5e / v6e: 128 MiB physical VMEM
        return 64 * 1024 * 1024
    return 28 * 1024 * 1024      # v7x: 64 MiB physical VMEM


def _pick_block_m(m, h, in_bytes, out_bytes, res_bytes, budget_bytes):
    """Row-tile size from a VMEM budget; multiple of 8; >= ~4 grid blocks when possible."""
    resident = 2 * (h * h * in_bytes + h * 4)                 # double-buffered W + f32 bias
    per_row = 2 * h * (in_bytes + out_bytes + res_bytes)      # double-buffered x(+res) + out
    avail = budget_bytes - resident
    if avail < per_row * 8:
        # TODO(synk): K-tiling fallback for hidden sizes whose resident weight blows the
        # budget; unreachable for Segformer (H <= 512) and guarded in the wrapper.
        avail = per_row * 8
    tm = avail // per_row
    tm = min(tm, 1024)                                        # ~HBM-roofline plateau
    tm = min(tm, max(8, _round_up(pl.cdiv(m, 4), 8)))         # >= ~4 blocks (v7x: 2 TCs)
    tm = max(8, (tm // 8) * 8)
    return tm


def prepare_self_output_weight(weight, compute_dtype=jnp.bfloat16):
    """Pre-transpose (+cast) the nn.Linear weight once at parameter-prep time."""
    return weight.T.astype(compute_dtype)


# ----------------------------- wrapper ---------------------------------------


def segformer_self_output(
    hidden_states,
    input_tensor,
    weight,
    bias,
    *,
    compute_dtype=jnp.bfloat16,
    out_dtype=None,
    fuse_residual=False,
    force_pallas=False,
    weight_is_pretransposed=False,
):
    """Equivalent of SegformerSelfOutput.forward.

    hidden_states: (B, S, H)
    input_tensor:  unused unless fuse_residual=True (module forward ignores it)
    weight:        (H, H) PyTorch nn.Linear weight (out_features, in_features),
                   or (H_in, H_out) if weight_is_pretransposed=True
    bias:          (H,)
    """
    B, S, H = hidden_states.shape
    M = B * S
    out_dtype = hidden_states.dtype if out_dtype is None else out_dtype

    w_t = weight if weight_is_pretransposed else weight.T      # (H_in, H_out), lane-dense out
    b_row = bias.astype(jnp.float32).reshape(1, H)

    x2d = hidden_states.reshape(M, H)
    r2d = input_tensor.reshape(M, H) if fuse_residual else None

    cdt = hidden_states.dtype if compute_dtype is None else jnp.dtype(compute_dtype)

    use_pallas = force_pallas or (H % 128 == 0)
    # Robustness: if even the double-buffered resident weight cannot fit a sane VMEM
    # budget, fall back to XLA rather than fail to compile (would need K tiling).
    if use_pallas and 2 * H * H * jnp.dtype(cdt).itemsize > (48 << 20):
        use_pallas = False  # TODO(synk): K-tile the contraction for very large H.

    if not use_pallas:
        # Small Segformer stages (H = 32 / 64 / 160): lane axis is not 128-dense, so
        # the kernel's stores would be masked partial writes -- plain XLA is at least
        # as good and avoids a custom-call boundary.
        y = jnp.dot(x2d, w_t.astype(x2d.dtype), preferred_element_type=jnp.float32) + b_row
        if fuse_residual:
            y = y + r2d.astype(jnp.float32)
        return y.astype(out_dtype).reshape(B, S, H)

    # ---- Pallas path (lane-dense H, HBM-bound streaming matmul) ----
    x2d = x2d.astype(cdt)
    w_t = w_t.astype(cdt)

    in_bytes = jnp.dtype(cdt).itemsize
    out_bytes = jnp.dtype(out_dtype).itemsize
    res_bytes = jnp.dtype(r2d.dtype).itemsize if fuse_residual else 0

    tm = _pick_block_m(M, H, in_bytes, out_bytes, res_bytes, _vmem_budget_bytes())
    grid = (pl.cdiv(M, tm),)  # ragged tail: Pallas masks the out-of-range stores

    footprint = (
        2 * (H * H * in_bytes + H * 4)                       # resident W + bias (x2 buffers)
        + 2 * tm * H * (in_bytes + out_bytes + res_bytes)    # double-buffered tiles
    )
    vmem_limit = max(int(footprint) + (8 << 20), 32 << 20)   # headroom for Mosaic scratch

    cost = pl.CostEstimate(
        flops=2 * M * H * H,
        transcendentals=0,
        bytes_accessed=(
            M * H * (in_bytes + out_bytes + res_bytes) + H * H * in_bytes + H * 4
        ),
    )

    x_spec = pl.BlockSpec((tm, H), lambda i: (i, 0))          # streamed activation tiles
    w_spec = pl.BlockSpec((H, H), lambda i: (0, 0))           # weight: VMEM-resident
    b_spec = pl.BlockSpec((1, H), lambda i: (0, 0))           # bias:   VMEM-resident
    o_spec = pl.BlockSpec((tm, H), lambda i: (i, 0))

    if fuse_residual:
        kernel = _dense_residual_kernel
        in_specs = [x_spec, pl.BlockSpec((tm, H), lambda i: (i, 0)), w_spec, b_spec]
        args = (x2d, r2d, w_t, b_row)
    else:
        kernel = _dense_kernel
        in_specs = [x_spec, w_spec, b_spec]
        args = (x2d, w_t, b_row)

    out2d = pl.pallas_call(
        kernel,
        out_shape=jax.ShapeDtypeStruct((M, H), out_dtype),
        grid_spec=pltpu.PrefetchScalarGridSpec(
            num_scalar_prefetch=0,
            grid=grid,
            in_specs=in_specs,
            out_specs=o_spec,
        ),
        compiler_params=pltpu.CompilerParams(
            dimension_semantics=("parallel",),                # independent row tiles
            vmem_limit_bytes=vmem_limit,
        ),
        cost_estimate=cost,
    )(*args)

    return out2d.reshape(B, S, H)


# ----------------------------- self-test -------------------------------------


if __name__ == "__main__":
    key = jax.random.PRNGKey(0)
    k_x, k_r, k_w, k_b = jax.random.split(key, 4)

    # Case 1: Segformer-B0 first-stage size (H=32) -> dispatched to the XLA path.
    B, S, H = 2, 8, 32
    x = jax.random.normal(k_x, (B, S, H), dtype=jnp.float32)
    res = jax.random.normal(k_r, (B, S, H), dtype=jnp.float32)
    w = jax.random.normal(k_w, (H, H), dtype=jnp.float32) * 0.02
    b = jax.random.normal(k_b, (H,), dtype=jnp.float32) * 0.02
    ref = x @ w.T + b
    out = jax.block_until_ready(segformer_self_output(x, res, w, b))
    assert out.shape == (B, S, H) and out.dtype == x.dtype
    assert jnp.allclose(out, ref, atol=1e-4, rtol=1e-4)

    # Case 2: same H=32 but force the Pallas kernel in f32 -> validates the masked-lane
    # stores and the ragged last row tile (M = 26, tm = 8).
    B2, S2 = 2, 13
    x2 = jax.random.normal(k_x, (B2, S2, H), dtype=jnp.float32)
    r2 = jax.random.normal(k_r, (B2, S2, H), dtype=jnp.float32)
    ref2 = x2 @ w.T + b
    out2 = jax.block_until_ready(
        segformer_self_output(x2, r2, w, b, compute_dtype=jnp.float32, force_pallas=True)
    )
    assert out2.shape == (B2, S2, H)
    assert jnp.allclose(out2, ref2, atol=2e-3, rtol=2e-3)

    # Case 3: production-like lane-dense hidden size (H=256), default bf16 compute,
    # ragged tail (M = 18, tm = 8), f32 output.
    H3, B3, S3 = 256, 2, 9
    kx3, kr3, kw3, kb3 = jax.random.split(jax.random.PRNGKey(1), 4)
    x3 = jax.random.normal(kx3, (B3, S3, H3), dtype=jnp.float32)
    r3 = jax.random.normal(kr3, (B3, S3, H3), dtype=jnp.float32)
    w3 = jax.random.normal(kw3, (H3, H3), dtype=jnp.float32) * 0.02
    b3 = jax.random.normal(kb3, (H3,), dtype=jnp.float32) * 0.02
    ref3 = x3 @ w3.T + b3
    out3 = jax.block_until_ready(segformer_self_output(x3, r3, w3, b3))
    assert out3.shape == (B3, S3, H3) and out3.dtype == x3.dtype
    assert jnp.allclose(out3, ref3, atol=3e-2, rtol=3e-2)

    # Case 4: optional fused residual epilogue (opt-in; differs from module boundary).
    ref4 = ref3 + r3
    out4 = jax.block_until_ready(
        segformer_self_output(x3, r3, w3, b3, fuse_residual=True)
    )
    assert jnp.allclose(out4, ref4, atol=3e-2, rtol=3e-2)

    print("KERNEL_OK")
</pallas_src>

<mosaic_0001>
module attributes {stable_mosaic.version = 11 : i64} {
  func.func @_dense_kernel(%arg0: i32, %arg1: memref<8x32xf32, #tpu.memory_space<vmem>>, %arg2: memref<32x32xf32, #tpu.memory_space<vmem>>, %arg3: memref<1x32xf32, #tpu.memory_space<vmem>>, %arg4: memref<8x32xf32, #tpu.memory_space<vmem>>) attributes {dimension_semantics = [#tpu.dimension_semantics<parallel>], iteration_bounds = array<i64: 4>, scalar_prefetch = 0 : i64, scratch_operands = 0 : i64, tpu.core_type = #tpu.core_type<tc>, window_params = [{transform_indices = @transform_0, window_bounds = array<i64: 8, 32>}, {pipeline_mode = #tpu.pipeline_mode<synchronous>, transform_indices = @transform_1, window_bounds = array<i64: 32, 32>}, {pipeline_mode = #tpu.pipeline_mode<synchronous>, transform_indices = @transform_2, window_bounds = array<i64: 1, 32>}, {transform_indices = @transform_3, window_bounds = array<i64: 8, 32>}]} {
    %c0 = arith.constant 0 : index
    %c0_0 = arith.constant 0 : index
    %0 = vector.load %arg1[%c0, %c0_0] : memref<8x32xf32, #tpu.memory_space<vmem>>, vector<8x32xf32>
    %c0_1 = arith.constant 0 : index
    %c0_2 = arith.constant 0 : index
    %1 = vector.load %arg2[%c0_1, %c0_2] : memref<32x32xf32, #tpu.memory_space<vmem>>, vector<32x32xf32>
    %cst = arith.constant dense<0.000000e+00> : vector<8x32xf32>
    %2 = tpu.matmul %0, %1, %cst {dimension_numbers = #tpu.dot_dimension_numbers<[1], [0], [0], [1], [0, 0, 1, 1], [], []>} : vector<8x32xf32>, vector<32x32xf32>, vector<8x32xf32> -> vector<8x32xf32>
    %c0_3 = arith.constant 0 : index
    %c0_4 = arith.constant 0 : index
    %3 = vector.load %arg3[%c0_3, %c0_4] : memref<1x32xf32, #tpu.memory_space<vmem>>, vector<1x32xf32>
    %4 = vector.broadcast %3 : vector<1x32xf32> to vector<8x32xf32>
    %5 = arith.addf %2, %4 : vector<8x32xf32>
    %c0_5 = arith.constant 0 : index
    %c0_6 = arith.constant 0 : index
    %6 = vector.load %arg4[%c0_5, %c0_6] : memref<8x32xf32, #tpu.memory_space<vmem>>, vector<8x32xf32>
    tpu.vector_store %arg4[%c0_5, %c0_6], %5 {strides = array<i32>} : memref<8x32xf32, #tpu.memory_space<vmem>>, vector<8x32xf32>,
    return
  }
  func.func @transform_0(%arg0: i32) -> (i32, i32) {
    %c0_i32 = arith.constant 0 : i32
    %c0_i32_0 = arith.constant 0 : i32
    return %arg0, %c0_i32 : i32, i32
  }
  func.func @transform_1(%arg0: i32) -> (i32, i32) {
    %c0_i32 = arith.constant 0 : i32
    %c0_i32_0 = arith.constant 0 : i32
    %c0_i32_1 = arith.constant 0 : i32
    return %c0_i32, %c0_i32_0 : i32, i32
  }
  func.func @transform_2(%arg0: i32) -> (i32, i32) {
    %c0_i32 = arith.constant 0 : i32
    %c0_i32_0 = arith.constant 0 : i32
    %c0_i32_1 = arith.constant 0 : i32
    return %c0_i32, %c0_i32_0 : i32, i32
  }
  func.func @transform_3(%arg0: i32) -> (i32, i32) {
    %c0_i32 = arith.constant 0 : i32
    %c0_i32_0 = arith.constant 0 : i32
    return %arg0, %c0_i32 : i32, i32
  }
}

</mosaic_0001>

<bundles_post_ra>
// kernel: tpu_custom_call.1
= control target key start
LH: loop header
LB: loop body
LE: loop exit
PB: predicated region body
PF: predicated region fallthrough
CT: control target
= control target key end

     0   :  { %8 = vsyncpa [#allocation3], 0  ;;  %s787_s0 = inlined_call_operand.hbm [shape: f32[26,32], index: 0, kind: input, shape index: {}]   ;;  %s788_s1 = inlined_call_operand.hbm [shape: f32[32,32], index: 1, kind: input, shape index: {}]   ;;  %s789_s2 = inlined_call_operand.vmem [shape: f32[1,32], index: 2, kind: input, shape index: {}]   ;;  %s790_s3 = inlined_call_operand.hbm [shape: f32[26,32], index: 3, kind: output, shape index: {}]  }
   0x1   :  { %10 = vsyncpa [#allocation3 + $0x1], 0 }
   0x2   :  { %11 = vsyncpa [#allocation6], 0 }
   0x3   :  { %12 = vsyncpa [#allocation4], 0 }
   0x4   :  { %14 = vsyncpa [#allocation4 + $0x1], 0  ;;  %s626_s12 = smov 0   ;;  %s628_s13 = smov 0  }
   0x5   :  { %s630_s14 = smov 0   ;;  %s632_s15 = smov 0  }
   0x6 LB: > { %s647_s16 = sadd.s32 4294967295, %s597_s15   ;;  %s382_s17 = sadd.s32 4294967294, %s597_s15   ;;  %s597_s15 = sphi %s632_s15, %s811_s15   ;;  %s593_s14 = sphi %s630_s14, %s810_s14   ;;  %s589_s13 = sphi %s628_s13, %s809_s13   ;;  %s585_s12 = sphi %s626_s12, %s808_s12  }
   0x7   : > { %p40_p0 = scmp.ne.s32.totalorder %s589_s13, %s585_s12  ;;  %p791_p1 = scmp.eq.s32.totalorder %s647_s16, 0 }
   0x8   : > { %p112_p3 = scmp.eq.s32.totalorder %s382_s17, 3  ;;  %p383_p5 = scmp.ge.s32.totalorder %s597_s15, 1 }
   0x9   : > { %p656_p4 = por %p791_p1, %p40_p0  ;;  %p119_p7 = scmp.lt.s32.totalorder %s597_s15, 5 }
   0xa   : > { %p661_p6 = por %p112_p3, %p40_p0  ;;  %s599_s21 = smov [#allocation5]  }
   0xb   : > { %s795_s18 = scalar_select %p656_p4, 1, 0 }
   0xc   : > { %s796_s19 = scalar_select %p661_p6, 1, 0 }
   0xd   : > { %p666_p8 = pnand %p383_p5, %p119_p7  ;;  %s131_s22 = sshll.u32 %s599_s21, 4  ;;  %s132_s22 = int_to_ptr.vmem [resolvable:$true] %s131_s22 }
   0xe   : > { %s679_s24 = sadd.s32 1, %s597_s15   ;;  %s27_s25 = sadd.s32 1, %s593_s14 }
   0xf   : > { %s797_s20 = scalar_select %p666_p8, 1, 0 }
  0x10   : > { %p422_p9 = pneg %p666_p8  ;;  %s24_s26 = ssub.s32 %s597_s15, %s679_s24 }
  0x11   : > { %s486_s27 = scalar_lea.vmem %s132_s22, 512  ;;  %p494_p3 = scmp.lt.s32.totalorder %s132_s22, %s132_s22 }
  0x12   : > { %p674_p10 = pnand %p422_p9, %p791_p1  ;;  %p487_p12 = scmp.ne.s32.totalorder %s132_s22, %s486_s27 }
  0x13   : > { %p495_p5 = scmp.lt.s32.totalorder %s486_s27, %s486_s27 }
  0x14   : > { %p477_p11 = pneg %p674_p10 }
  0x15   : > { %p496_p7 = por %p495_p5, %p494_p3 }
  0x16   : > { %p489_p13 = pnand %p487_p12, %p477_p11 }
  0x18   : > { %p490_p0 = pneg %p489_p13 }
  0x1a   : > { %p497_p2 = pnand %p496_p7, %p490_p0 }
  0x1c   : > { %500 = shalt.err (!%p497_p2)
}
  0x1d   : > { %s600_s28 = smov 128   ;;  %s601_s29 = smov 8  }
  0x1e   : > { %425 = dma.hbm_to_vmem [thread:$0]  (!%p674_p10), %s788_s1, 512, %s132_s22, [#allocation6], %s600_s28, %s600_s28, %s601_s29  }
  0x1f   : > { %p25_p9 = scmp.eq.s32.totalorder %s24_s26, 0  ;;  %p34_p11 = scmp.ne.s32.totalorder %s593_s14, %s589_s13 }
  0x20   : > { %p35_p12 = scmp.eq.s32.totalorder %s597_s15, 0  ;;  %p435_p2 = scmp.lt.s32.totalorder %s597_s15, 4 }
  0x21   : > { %s696_s5 = scalar_select %p25_p9, %s593_s14, %s27_s25  }
  0x22   : > { %p36_p13 = por %p35_p12, %p34_p11  ;;  %p799_p0 = scmp.eq.s32.totalorder %s647_s16, 3 }
  0x23   : > { %s148_s7 = sand.u32 1, %s593_s14   ;;  %s387_s8 = sshll.u32 %s597_s15, 7 }
  0x24   : > { %p700_p3 = por %p799_p0, %p34_p11  ;;  %s386_s9 = sshll.u32 %s148_s7, 3 }
  0x25   : > { %s709_s17 = scalar_lea.hbm %s787_s0, %s387_s8  ;;  %s152_s21 = scalar_lea.vmem [#allocation2], %s386_s9 }
  0x26   : > { %s800_s6 = scalar_select %p700_p3, 1, 0 }
  0x27   : > { %s159_s22 = sshll.u32 %s152_s21, 4  ;;  %p711_p10 = pnand %p435_p2, %p36_p13  ;;  %s160_s22 = int_to_ptr.vmem [resolvable:$true] %s159_s22 }
  0x28   : > { %s149_s25 = scalar_lea.sflag [#allocation3], %s148_s7  ;;  %s501_s26 = scalar_lea.hbm %s709_s17, 128 }
  0x29   : > { %p502_p5 = scmp.ne.s32.totalorder %s709_s17, %s501_s26  ;;  %p503_p7 = pneg %p711_p10 }
  0x2a   : > { %s506_s29 = scalar_lea.hbm %s787_s0, 512  ;;  %p507_p12 = scmp.lt.s32.totalorder %s709_s17, %s787_s0 }
  0x2b   : > { %p504_p9 = pnand %p503_p7, %p502_p5  ;;  %p508_p2 = scmp.lt.s32.totalorder %s506_s29, %s501_s26 }
  0x2d   : > { %p505_p11 = pneg %p504_p9  ;;  %p509_p13 = por %p508_p2, %p507_p12 }
  0x2f   : > { %p510_p0 = pnand %p509_p13, %p505_p11 }
  0x31   : > { %513 = shalt.err (!%p510_p0)
}
  0x32   : > { %s514_s8 = scalar_lea.vmem %s160_s22, 128  ;;  %s602_s7 = smov [#allocation2]  }
  0x33   : > { %p515_p1 = scmp.ne.s32.totalorder %s160_s22, %s514_s8  ;;  %s519_s9 = sshll.u32 %s602_s7, 4  ;;  %s520_s9 = int_to_ptr.vmem [resolvable:$false] %s519_s9 }
  0x34   : > { %s521_s10 = scalar_lea.vmem %s520_s9, 256  ;;  %p522_p5 = scmp.lt.s32.totalorder %s160_s22, %s520_s9 }
  0x35   : > { %p517_p6 = pnand %p515_p1, %p503_p7  ;;  %p523_p9 = scmp.lt.s32.totalorder %s521_s10, %s514_s8 }
  0x37   : > { %p518_p3 = pneg %p517_p6  ;;  %p524_p4 = por %p523_p9, %p522_p5 }
  0x39   : > { %p525_p8 = pnand %p524_p4, %p518_p3 }
  0x3b   : > { %528 = shalt.err (!%p525_p8)
}
  0x3c   : > { %429 = dma.hbm_to_vmem [thread:$0]  (!%p711_p10), %s709_s17, 128, %s160_s22, %s149_s25  }
  0x3d   : > { %p802_p11 = scmp.ne.s32.totalorder %s797_s20, 0 }
  0x3e   : > { %s732_s11 = sand.u32 (!%p802_p11), 1, %s589_s13   ;;  %p803_p1 = scmp.ne.s32.totalorder (!%p802_p11), %s795_s18, 0 }
  0x3f   : > { %168 = sbr.rel (%p802_p11) target bundleno = 289 (0x121), region = 32  ;;  %s389_s21 = sshll.u32 (!%p802_p11), %s732_s11, 3 }
  0x40   : > { %s171_s26 = scalar_lea.sflag (!%p802_p11), [#allocation3], %s732_s11  ;;  %s174_s27 = scalar_lea.vmem (!%p802_p11), [#allocation2], %s389_s21 }
  0x44   : > { %572 = dma.done.wait (%p803_p1), %s171_s26, 128  }
  0x45   : > { %574 = vsyncadd (%p803_p1), %s171_s26, 4294967168  ;;  %p804_p4 = scmp.eq.s32.totalorder %s647_s16, 0 }
  0x47   : > { %576 = dma.done.wait (%p804_p4), [#allocation6], 512   ;;  %p805_p6 = pmov %p804_p4 }
  0x48   : > { %v603_v0 = vmov 0.0   ;;  %vm604_vm0 = vmmov 0   ;;  %v205_v1 = vld [vmem:[#allocation5 + $0x18] sm:$0xff]  ;;  %v204_v2 = vld [vmem:[#allocation5 + $0x10] sm:$0xff]  ;;  %v203_v3 = vld [vmem:[#allocation5 + $0x8] sm:$0xff]  ;;  %vm213_vm1 = vcmask 261120  }
  0x49   : > { %578 = vsyncadd (%p805_p6), [#allocation6], 4294966784  ;;  %403 = vmatprep.subr.mxu0 %v603_v0  ;;  %411 = vmatprep.mubr.msk.f32.mxu0 %vm604_vm0, %v603_v0  ;;  %v202_v4 = vld [vmem:[#allocation5] sm:$0xff]  ;;  %v201_v5 = vld [vmem:[%s174_s27] sm:$0xff]  ;;  %s395_s17 = sshll.u32 %s647_s16, 7  ;;  %s200_s22 = scalar_lea.vmem [#allocation7], %s389_s21 }
  0x4a   : > { %404 = vmatpush3.msra.mxu0 %v205_v1  ;;  %v392_v6 = vld [vmem:[%s789_s2] ss:$0 sm:$0xff]  ;;  %s302_s23 = sshll.u32 %s200_s22, 4  ;;  %s751_s29 = scalar_lea.hbm %s790_s3, %s395_s17  ;;  %s303_s23 = int_to_ptr.vmem [resolvable:$true] %s302_s23 }
  0x4b   : > { %405 = vmatprep.subr.mxu0 %v603_v0  ;;  %s289_s30 = scalar_lea.sflag [#allocation4], %s732_s11  ;;  %s529_s4 = scalar_lea.vmem %s303_s23, 128 }
  0x4c   : > { %406 = vmatpush3.msra.mxu0 %v204_v2  ;;  %p530_p8 = scmp.ne.s32.totalorder %s303_s23, %s529_s4  ;;  %p806_p3 = scmp.ne.s32.totalorder %s800_s6, 0 }
  0x4d   : > { %407 = vmatprep.subr.mxu0 %v603_v0  ;;  %s605_s8 = smov [#allocation7]  }
  0x4e   : > { %408 = vmatpush3.msra.mxu0 %v203_v3  ;;  %p531_p10 = pnand %p530_p8, %p806_p3  ;;  %s533_s16 = sshll.u32 %s605_s8, 4  ;;  %s534_s16 = int_to_ptr.vmem [resolvable:$false] %s533_s16 }
  0x4f   : > { %409 = vmatprep.subr.mxu0 %v603_v0  ;;  %s535_s7 = scalar_lea.vmem %s534_s16, 256  ;;  %p536_p12 = scmp.lt.s32.totalorder %s303_s23, %s534_s16 }
  0x50   : > { %410 = vmatpush3.msra.mxu0 %v202_v4  ;;  %p532_p7 = pneg %p531_p10  ;;  %p537_p2 = scmp.lt.s32.totalorder %s535_s7, %s529_s4 }
  0x51   : > { %412 = vmatmul.mubr.msk.f32.vlgmr.msra.gmra.mxu0 %vm213_vm1, %v201_v5 }
  0x52   : > { %p538_p13 = por %p537_p2, %p536_p12 }
  0x54   : > { %p539_p0 = pnand %p538_p13, %p532_p7 }
 0x111   : > { %v283_v7 = vpop.f32.mrf.mxu0 }
 0x112   : > { %v284_v8 = vadd.f32 %v392_v6, %v283_v7 }
 0x113   : > { %v413_v9 = vpop.f32.mrf.mxu0 }
 0x114   : > { %287 = vst.msk [vmem:[%s200_s22] sm:$0xff] %vm213_vm1, %v284_v8 }
 0x115   : > { %542 = shalt.err (!%p539_p0)
}
 0x116   : > { %s543_s9 = scalar_lea.hbm %s751_s29, 128  ;;  %s547_s21 = scalar_lea.hbm %s790_s3, 512 }
 0x117   : > { %p544_p5 = scmp.ne.s32.totalorder %s751_s29, %s543_s9  ;;  %p548_p1 = scmp.lt.s32.totalorder %s751_s29, %s790_s3 }
 0x118   : > { %p549_p4 = scmp.lt.s32.totalorder %s547_s21, %s543_s9 }
 0x119   : > { %p545_p9 = pnand %p544_p5, %p806_p3 }
 0x11a   : > { %p550_p6 = por %p549_p4, %p548_p1 }
 0x11b   : > { %p546_p11 = pneg %p545_p9 }
 0x11d   : > { %p551_p8 = pnand %p550_p6, %p546_p11 }
 0x11f   : > { %554 = shalt.err (!%p551_p8)
}
 0x120   : > { %420 = dma.vmem_to_hbm [thread:$0]  (%p806_p3), %s303_s23, 128, %s751_s29, %s289_s30  }
 0x121 PF: > { %p437_p10 = scmp.ge.s32.totalorder %s597_s15, 2  ;;  %s314_s18 = sand.u32 1, %s585_s12  }
 0x122   : > { %p807_p7 = scmp.ne.s32.totalorder %s796_s19, 0  ;;  %s315_s20 = scalar_lea.sflag [#allocation4], %s314_s18 }
 0x124   : > { %p431_p12 = pnand %p437_p10, %p807_p7 }
 0x126   : > { %p432_p2 = pneg %p431_p12 }
 0x128   : > { %580 = dma.done.wait (%p432_p2), %s315_s20, 128  }
 0x129   : > { %582 = vsyncadd (%p432_p2), %s315_s20, 4294967168  ;;  %p17_p13 = scmp.ge.s32.totalorder %s679_s24, 6   ;;  %s808_s12 = smov %s589_s13 }
 0x12a   : > { %s809_s13 = smov %s593_s14  ;;  %s810_s14 = smov %s696_s5 }
 0x12b   : > { %s811_s15 = smov %s679_s24  ;;  %19 = sbr.rel (!%p17_p13) target bundleno = 6 (0x6), region = 81 }
 0x130   :  { %320 = vsyncpa [#allocation3], 1 }
 0x131   :  { %322 = vsyncpa [#allocation3 + $0x1], 1 }
 0x132   :  { %323 = vsyncpa [#allocation6], 1 }
 0x133   :  { %324 = vsyncpa [#allocation4], 1 }
 0x134   :  { %326 = vsyncpa [#allocation4 + $0x1], 1 }

</bundles_post_ra>
